<compile_context>
chip_gen: v5e
topology: v5e:2x2
jax: 0.10.0
libtpu: 0.0.40
codegen_flags: <defaults>
</compile_context>

<pallas_src>
import functools

import jax
import jax.numpy as jnp
from jax.experimental import pallas as pl
from jax.experimental.pallas import tpu as pltpu


def _round_up(x, m):
    return (x + m - 1) // m * m


def _cbd_fused_kernel(p_ref, w_ref, b_ref, g_ref, bt_ref, o_ref,
                      sum_ref, sq_ref, scale_ref, shift_ref,
                      *, tm, m_valid, eps):
    pss = pl.program_id(0)            # 0 = stats pass, 1 = apply pass
    i = pl.program_id(1)              # M tile index
    last = pl.num_programs(1) - 1

    @pl.when((pss == 0) & (i == 0))
    def _init():
        sum_ref[...] = jnp.zeros_like(sum_ref)
        sq_ref[...] = jnp.zeros_like(sq_ref)

    # Conv1d as one im2col GEMM tile: bf16 x bf16 -> f32 on the MXU, plus conv bias.
    y = jnp.dot(p_ref[...], w_ref[...], preferred_element_type=jnp.float32)
    y = y + b_ref[...]

    # Training-mode BatchNorm1d batch statistics. Only the last tile can contain
    # sublane-padded rows, so only it pays for the iota/compare/select mask.
    @pl.when((pss == 0) & (i < last))
    def _stats_full():
        sum_ref[...] += jnp.sum(y, axis=0, keepdims=True)
        sq_ref[...] += jnp.sum(y * y, axis=0, keepdims=True)

    @pl.when((pss == 0) & (i == last))
    def _stats_masked():
        row = i * tm + jax.lax.broadcasted_iota(jnp.int32, (tm, 1), 0)
        ym = jnp.where(row < m_valid, y, 0.0)
        sum_ref[...] += jnp.sum(ym, axis=0, keepdims=True)
        sq_ref[...] += jnp.sum(ym * ym, axis=0, keepdims=True)

    # One-time finalize: (sum, sumsq) -> per-channel affine (scale, shift) in VMEM.
    @pl.when((pss == 1) & (i == 0))
    def _finalize():
        inv_m = 1.0 / m_valid
        mean = sum_ref[...] * inv_m
        var = jnp.maximum(sq_ref[...] * inv_m - mean * mean, 0.0)   # biased, clamped
        scale = g_ref[...] * jax.lax.rsqrt(var + eps)
        scale_ref[...] = scale
        shift_ref[...] = bt_ref[...] - mean * scale

    # Apply pass: fused BN affine + ReLU, the only HBM output written.
    @pl.when(pss == 1)
    def _apply():
        o_ref[...] = jnp.maximum(
            y * scale_ref[...] + shift_ref[...], 0.0).astype(o_ref.dtype)


def cbd_block1d_forward(x, weight, bias, gamma, beta, *, stride=1, padding=0,
                        eps=1e-5):
    """Conv1d -> BatchNorm1d (training batch stats) -> ReLU -> Dropout(identity).

    x: (N, C_in, L) f32; weight: (C_out, C_in, K); bias/gamma/beta: (C_out,).
    Returns (N, C_out, L_out) in x.dtype.
    """
    N, Cin, L = x.shape
    Cout, _, K = weight.shape
    L_out = (L + 2 * padding - K) // stride + 1

    # ---- im2col (layout plumbing, done once in plain JAX) --------------------
    if padding:
        x = jnp.pad(x, ((0, 0), (0, 0), (padding, padding)))
    x_nlc = jnp.transpose(x, (0, 2, 1))                        # (N, Lp, Cin)
    taps = [x_nlc[:, k:k + stride * L_out:stride, :] for k in range(K)]
    patches = jnp.stack(taps, axis=2).reshape(N * L_out, K * Cin)
    w_mat = jnp.transpose(weight, (2, 1, 0)).reshape(K * Cin, Cout)

    M, KC = N * L_out, K * Cin
    C_pad = _round_up(Cout, 128)                               # lane-dense channels
    KC_pad = _round_up(KC, 16)                                 # bf16 sublane-friendly
    if M <= 512:                                               # larger M tile: 512 ~85% of
        tm = _round_up(M, 16)                                  # the mem-bound roofline
    else:
        tm = 512
    M_pad = _round_up(M, tm)

    patches_p = jnp.zeros((M_pad, KC_pad), jnp.bfloat16).at[:M, :KC].set(
        patches.astype(jnp.bfloat16))
    w_p = jnp.zeros((KC_pad, C_pad), jnp.bfloat16).at[:KC, :Cout].set(
        w_mat.astype(jnp.bfloat16))
    b_p = jnp.zeros((1, C_pad), jnp.float32).at[0, :Cout].set(bias.astype(jnp.float32))
    g_p = jnp.zeros((1, C_pad), jnp.float32).at[0, :Cout].set(gamma.astype(jnp.float32))
    bt_p = jnp.zeros((1, C_pad), jnp.float32).at[0, :Cout].set(beta.astype(jnp.float32))

    n_tiles = M_pad // tm
    grid = (2, n_tiles)                                        # (pass, M tile)

    # Explicit VMEM budget: double-buffered patches tile + resident weight + output
    # tile + small per-channel vectors / scratch. Raised above v5e's 16 MiB scoped
    # default when needed, capped well below v7x's 64 MiB physical VMEM.
    out_bytes = jnp.dtype(x.dtype).itemsize
    vmem_bytes = (2 * tm * KC_pad * 2 + 2 * KC_pad * C_pad * 2
                  + 2 * tm * C_pad * out_bytes + 32 * C_pad * 4)
    vmem_limit = min(max(2 * vmem_bytes + (2 << 20), 32 << 20), 48 << 20)

    out = pl.pallas_call(
        functools.partial(_cbd_fused_kernel, tm=tm, m_valid=M, eps=eps),
        grid=grid,
        in_specs=[
            pl.BlockSpec((tm, KC_pad), lambda p, i: (i, 0)),   # patches tile (both passes)
            pl.BlockSpec((KC_pad, C_pad), lambda p, i: (0, 0)),  # weight (resident)
            pl.BlockSpec((1, C_pad), lambda p, i: (0, 0)),     # conv bias
            pl.BlockSpec((1, C_pad), lambda p, i: (0, 0)),     # gamma
            pl.BlockSpec((1, C_pad), lambda p, i: (0, 0)),     # beta
        ],
        # Index (i * p, 0): during the stats pass (p==0) the output block index never
        # changes, so no HBM writebacks happen; pass 1 streams each tile exactly once.
        out_specs=pl.BlockSpec((tm, C_pad), lambda p, i: (i * p, 0)),
        out_shape=jax.ShapeDtypeStruct((M_pad, C_pad), x.dtype),
        scratch_shapes=[
            pltpu.VMEM((1, C_pad), jnp.float32),               # sum
            pltpu.VMEM((1, C_pad), jnp.float32),               # sumsq
            pltpu.VMEM((1, C_pad), jnp.float32),               # scale
            pltpu.VMEM((1, C_pad), jnp.float32),               # shift
        ],
        compiler_params=pltpu.CompilerParams(
            dimension_semantics=("arbitrary", "arbitrary"),    # scratch carries state
            vmem_limit_bytes=vmem_limit,
        ),
    )(patches_p, w_p, b_p, g_p, bt_p)

    # Final un-pad + NLC -> NCL permutation (consumers that accept channel-last could
    # take out[:M, :Cout].reshape(N, L_out, Cout) directly and skip this pass).
    out = out[:M, :Cout].reshape(N, L_out, Cout)
    return jnp.transpose(out, (0, 2, 1))                       # (N, C_out, L_out)


def cbd_block1d_ref(x, weight, bias, gamma, beta, *, stride=1, padding=0,
                    eps=1e-5):
    """Pure-JAX f32 reference: Conv1d -> training-mode BatchNorm1d -> ReLU."""
    y = jax.lax.conv_general_dilated(
        x, weight, window_strides=(stride,), padding=[(padding, padding)],
        dimension_numbers=("NCH", "OIH", "NCH"))
    y = y + bias[None, :, None]
    mean = jnp.mean(y, axis=(0, 2), keepdims=True)
    var = jnp.mean((y - mean) ** 2, axis=(0, 2), keepdims=True)   # biased
    y = (y - mean) * jax.lax.rsqrt(var + eps)
    y = y * gamma[None, :, None] + beta[None, :, None]
    return jnp.maximum(y, 0.0)


if __name__ == "__main__":
    # Small shapes consistent with the module: batch=2, in_channels=4,
    # out_channels=8, length=16, kernel_size=3, stride=1, padding=0.
    N, Cin, Cout, L, K = 2, 4, 8, 16, 3
    stride, padding, eps = 1, 0, 1e-5

    key = jax.random.PRNGKey(0)
    kx, kw, kb = jax.random.split(key, 3)
    x = jax.random.normal(kx, (N, Cin, L), dtype=jnp.float32)

    # PyTorch Conv1d init: U(-1/sqrt(C_in*K), 1/sqrt(C_in*K)); fresh BN affine.
    bound = 1.0 / jnp.sqrt(jnp.float32(Cin * K))
    weight = jax.random.uniform(kw, (Cout, Cin, K), jnp.float32, -bound, bound)
    bias = jax.random.uniform(kb, (Cout,), jnp.float32, -bound, bound)
    gamma = jnp.ones((Cout,), jnp.float32)
    beta = jnp.zeros((Cout,), jnp.float32)

    out = cbd_block1d_forward(x, weight, bias, gamma, beta,
                              stride=stride, padding=padding, eps=eps)
    out = jax.block_until_ready(out)

    ref = cbd_block1d_ref(x, weight, bias, gamma, beta,
                          stride=stride, padding=padding, eps=eps)
    L_out = (L + 2 * padding - K) // stride + 1
    assert out.shape == (N, Cout, L_out)
    # bf16 matmul operands (f32 accumulation) -> loosened tolerance vs f32 ref.
    assert jnp.allclose(out, ref, atol=3e-2, rtol=3e-2), "mismatch vs reference"

    print("KERNEL_OK")
</pallas_src>

<mosaic_0001>
module attributes {stable_mosaic.version = 11 : i64} {
  func.func @_cbd_fused_kernel(%arg0: i32, %arg1: i32, %arg2: memref<32x16xbf16, #tpu.memory_space<vmem>>, %arg3: memref<16x128xbf16, #tpu.memory_space<vmem>>, %arg4: memref<1x128xf32, #tpu.memory_space<vmem>>, %arg5: memref<1x128xf32, #tpu.memory_space<vmem>>, %arg6: memref<1x128xf32, #tpu.memory_space<vmem>>, %arg7: memref<32x128xf32, #tpu.memory_space<vmem>>, %arg8: memref<1x128xf32, #tpu.memory_space<vmem>>, %arg9: memref<1x128xf32, #tpu.memory_space<vmem>>, %arg10: memref<1x128xf32, #tpu.memory_space<vmem>>, %arg11: memref<1x128xf32, #tpu.memory_space<vmem>>) attributes {dimension_semantics = [#tpu.dimension_semantics<arbitrary>, #tpu.dimension_semantics<arbitrary>], iteration_bounds = array<i64: 2, 1>, scalar_prefetch = 0 : i64, scratch_operands = 4 : i64, tpu.core_type = #tpu.core_type<tc>, window_params = [{transform_indices = @transform_0, window_bounds = array<i64: 32, 16>}, {pipeline_mode = #tpu.pipeline_mode<synchronous>, transform_indices = @transform_1, window_bounds = array<i64: 16, 128>}, {pipeline_mode = #tpu.pipeline_mode<synchronous>, transform_indices = @transform_2, window_bounds = array<i64: 1, 128>}, {pipeline_mode = #tpu.pipeline_mode<synchronous>, transform_indices = @transform_3, window_bounds = array<i64: 1, 128>}, {pipeline_mode = #tpu.pipeline_mode<synchronous>, transform_indices = @transform_4, window_bounds = array<i64: 1, 128>}, {transform_indices = @transform_5, window_bounds = array<i64: 32, 128>}]} {
    %c0_i32 = arith.constant 0 : i32
    %0 = arith.cmpi eq, %arg0, %c0_i32 : i32
    %c0_i32_0 = arith.constant 0 : i32
    %1 = arith.cmpi eq, %arg1, %c0_i32_0 : i32
    %2 = arith.andi %0, %1 : i1
    %3 = arith.extui %2 : i1 to i32
    %c0_i32_1 = arith.constant 0 : i32
    %4 = arith.cmpi ne, %3, %c0_i32_1 : i32
    scf.if %4 {
      %cst_17 = arith.constant 0.000000e+00 : f32
      %29 = vector.broadcast %cst_17 : f32 to vector<1x128xf32>
      %c0_18 = arith.constant 0 : index
      %c0_19 = arith.constant 0 : index
      %30 = vector.load %arg8[%c0_18, %c0_19] : memref<1x128xf32, #tpu.memory_space<vmem>>, vector<1x128xf32>
      tpu.vector_store %arg8[%c0_18, %c0_19], %29 {strides = array<i32>} : memref<1x128xf32, #tpu.memory_space<vmem>>, vector<1x128xf32>,
      %cst_20 = arith.constant 0.000000e+00 : f32
      %31 = vector.broadcast %cst_20 : f32 to vector<1x128xf32>
      %c0_21 = arith.constant 0 : index
      %c0_22 = arith.constant 0 : index
      %32 = vector.load %arg9[%c0_21, %c0_22] : memref<1x128xf32, #tpu.memory_space<vmem>>, vector<1x128xf32>
      tpu.vector_store %arg9[%c0_21, %c0_22], %31 {strides = array<i32>} : memref<1x128xf32, #tpu.memory_space<vmem>>, vector<1x128xf32>,
    } else {
    }
    %c0 = arith.constant 0 : index
    %c0_2 = arith.constant 0 : index
    %5 = vector.load %arg2[%c0, %c0_2] : memref<32x16xbf16, #tpu.memory_space<vmem>>, vector<32x16xbf16>
    %c0_3 = arith.constant 0 : index
    %c0_4 = arith.constant 0 : index
    %6 = vector.load %arg3[%c0_3, %c0_4] : memref<16x128xbf16, #tpu.memory_space<vmem>>, vector<16x128xbf16>
    %cst = arith.constant dense<0.000000e+00> : vector<32x128xf32>
    %7 = tpu.matmul %5, %6, %cst {dimension_numbers = #tpu.dot_dimension_numbers<[1], [0], [0], [1], [0, 0, 1, 1], [], []>} : vector<32x16xbf16>, vector<16x128xbf16>, vector<32x128xf32> -> vector<32x128xf32>
    %c0_5 = arith.constant 0 : index
    %c0_6 = arith.constant 0 : index
    %8 = vector.load %arg4[%c0_5, %c0_6] : memref<1x128xf32, #tpu.memory_space<vmem>>, vector<1x128xf32>
    %9 = vector.broadcast %8 : vector<1x128xf32> to vector<32x128xf32>
    %10 = arith.addf %7, %9 : vector<32x128xf32>
    %c0_i32_7 = arith.constant 0 : i32
    %11 = arith.cmpi eq, %arg0, %c0_i32_7 : i32
    %c0_i32_8 = arith.constant 0 : i32
    %12 = arith.cmpi slt, %arg1, %c0_i32_8 : i32
    %13 = arith.andi %11, %12 : i1
    %14 = arith.extui %13 : i1 to i32
    %c0_i32_9 = arith.constant 0 : i32
    %15 = arith.cmpi ne, %14, %c0_i32_9 : i32
    scf.if %15 {
      %c0_17 = arith.constant 0 : index
      %c0_18 = arith.constant 0 : index
      %29 = vector.load %arg8[%c0_17, %c0_18] : memref<1x128xf32, #tpu.memory_space<vmem>>, vector<1x128xf32>
      %cst_19 = arith.constant dense<0.000000e+00> : vector<128xf32>
      %30 = vector.multi_reduction <add>, %10, %cst_19 [0] : vector<32x128xf32> to vector<128xf32>
      %31 = vector.shape_cast %30 : vector<128xf32> to vector<1x128xf32>
      %32 = arith.addf %29, %31 : vector<1x128xf32>
      %c0_20 = arith.constant 0 : index
      %c0_21 = arith.constant 0 : index
      %33 = vector.load %arg8[%c0_20, %c0_21] : memref<1x128xf32, #tpu.memory_space<vmem>>, vector<1x128xf32>
      tpu.vector_store %arg8[%c0_20, %c0_21], %32 {strides = array<i32>} : memref<1x128xf32, #tpu.memory_space<vmem>>, vector<1x128xf32>,
      %c0_22 = arith.constant 0 : index
      %c0_23 = arith.constant 0 : index
      %34 = vector.load %arg9[%c0_22, %c0_23] : memref<1x128xf32, #tpu.memory_space<vmem>>, vector<1x128xf32>
      %35 = arith.mulf %10, %10 : vector<32x128xf32>
      %cst_24 = arith.constant dense<0.000000e+00> : vector<128xf32>
      %36 = vector.multi_reduction <add>, %35, %cst_24 [0] : vector<32x128xf32> to vector<128xf32>
      %37 = vector.shape_cast %36 : vector<128xf32> to vector<1x128xf32>
      %38 = arith.addf %34, %37 : vector<1x128xf32>
      %c0_25 = arith.constant 0 : index
      %c0_26 = arith.constant 0 : index
      %39 = vector.load %arg9[%c0_25, %c0_26] : memref<1x128xf32, #tpu.memory_space<vmem>>, vector<1x128xf32>
      tpu.vector_store %arg9[%c0_25, %c0_26], %38 {strides = array<i32>} : memref<1x128xf32, #tpu.memory_space<vmem>>, vector<1x128xf32>,
    } else {
    }
    %c0_i32_10 = arith.constant 0 : i32
    %16 = arith.cmpi eq, %arg0, %c0_i32_10 : i32
    %c0_i32_11 = arith.constant 0 : i32
    %17 = arith.cmpi eq, %arg1, %c0_i32_11 : i32
    %18 = arith.andi %16, %17 : i1
    %19 = arith.extui %18 : i1 to i32
    %c0_i32_12 = arith.constant 0 : i32
    %20 = arith.cmpi ne, %19, %c0_i32_12 : i32
    scf.if %20 {
      %c32_i32 = arith.constant 32 : i32
      %29 = arith.muli %arg1, %c32_i32 : i32
      %30 = tpu.iota {dimensions = array<i32: 0>} : vector<32x1xi32>
      %31 = vector.broadcast %29 : i32 to vector<32x1xi32>
      %32 = arith.addi %31, %30 : vector<32x1xi32>
      %c28_i32 = arith.constant 28 : i32
      %33 = vector.broadcast %c28_i32 : i32 to vector<32x1xi32>
      %34 = arith.cmpi slt, %32, %33 : vector<32x1xi32>
      %cst_17 = arith.constant 0.000000e+00 : f32
      %35 = vector.shape_cast %34 : vector<32x1xi1> to vector<32x1xi1>
      %36 = vector.broadcast %35 : vector<32x1xi1> to vector<32x128xi1>
      %37 = vector.broadcast %cst_17 : f32 to vector<32x128xf32>
      %38 = arith.select %36, %10, %37 : vector<32x128xi1>, vector<32x128xf32>
      %c0_18 = arith.constant 0 : index
      %c0_19 = arith.constant 0 : index
      %39 = vector.load %arg8[%c0_18, %c0_19] : memref<1x128xf32, #tpu.memory_space<vmem>>, vector<1x128xf32>
      %cst_20 = arith.constant dense<0.000000e+00> : vector<128xf32>
      %40 = vector.multi_reduction <add>, %38, %cst_20 [0] : vector<32x128xf32> to vector<128xf32>
      %41 = vector.shape_cast %40 : vector<128xf32> to vector<1x128xf32>
      %42 = arith.addf %39, %41 : vector<1x128xf32>
      %c0_21 = arith.constant 0 : index
      %c0_22 = arith.constant 0 : index
      %43 = vector.load %arg8[%c0_21, %c0_22] : memref<1x128xf32, #tpu.memory_space<vmem>>, vector<1x128xf32>
      tpu.vector_store %arg8[%c0_21, %c0_22], %42 {strides = array<i32>} : memref<1x128xf32, #tpu.memory_space<vmem>>, vector<1x128xf32>,
      %c0_23 = arith.constant 0 : index
      %c0_24 = arith.constant 0 : index
      %44 = vector.load %arg9[%c0_23, %c0_24] : memref<1x128xf32, #tpu.memory_space<vmem>>, vector<1x128xf32>
      %45 = arith.mulf %38, %38 : vector<32x128xf32>
      %cst_25 = arith.constant dense<0.000000e+00> : vector<128xf32>
      %46 = vector.multi_reduction <add>, %45, %cst_25 [0] : vector<32x128xf32> to vector<128xf32>
      %47 = vector.shape_cast %46 : vector<128xf32> to vector<1x128xf32>
      %48 = arith.addf %44, %47 : vector<1x128xf32>
      %c0_26 = arith.constant 0 : index
      %c0_27 = arith.constant 0 : index
      %49 = vector.load %arg9[%c0_26, %c0_27] : memref<1x128xf32, #tpu.memory_space<vmem>>, vector<1x128xf32>
      tpu.vector_store %arg9[%c0_26, %c0_27], %48 {strides = array<i32>} : memref<1x128xf32, #tpu.memory_space<vmem>>, vector<1x128xf32>,
    } else {
    }
    %c1_i32 = arith.constant 1 : i32
    %21 = arith.cmpi eq, %arg0, %c1_i32 : i32
    %c0_i32_13 = arith.constant 0 : i32
    %22 = arith.cmpi eq, %arg1, %c0_i32_13 : i32
    %23 = arith.andi %21, %22 : i1
    %24 = arith.extui %23 : i1 to i32
    %c0_i32_14 = arith.constant 0 : i32
    %25 = arith.cmpi ne, %24, %c0_i32_14 : i32
    scf.if %25 {
      %c0_17 = arith.constant 0 : index
      %c0_18 = arith.constant 0 : index
      %29 = vector.load %arg8[%c0_17, %c0_18] : memref<1x128xf32, #tpu.memory_space<vmem>>, vector<1x128xf32>
      %cst_19 = arith.constant 0.0357142873 : f32
      %30 = vector.broadcast %cst_19 : f32 to vector<1x128xf32>
      %31 = arith.mulf %29, %30 : vector<1x128xf32>
      %c0_20 = arith.constant 0 : index
      %c0_21 = arith.constant 0 : index
      %32 = vector.load %arg9[%c0_20, %c0_21] : memref<1x128xf32, #tpu.memory_space<vmem>>, vector<1x128xf32>
      %cst_22 = arith.constant 0.0357142873 : f32
      %33 = vector.broadcast %cst_22 : f32 to vector<1x128xf32>
      %34 = arith.mulf %32, %33 : vector<1x128xf32>
      %35 = arith.mulf %31, %31 : vector<1x128xf32>
      %36 = arith.subf %34, %35 : vector<1x128xf32>
      %cst_23 = arith.constant 0.000000e+00 : f32
      %37 = vector.broadcast %cst_23 : f32 to vector<1x128xf32>
      %38 = arith.maximumf %36, %37 : vector<1x128xf32>
      %c0_24 = arith.constant 0 : index
      %c0_25 = arith.constant 0 : index
      %39 = vector.load %arg5[%c0_24, %c0_25] : memref<1x128xf32, #tpu.memory_space<vmem>>, vector<1x128xf32>
      %cst_26 = arith.constant 9.99999974E-6 : f32
      %40 = vector.broadcast %cst_26 : f32 to vector<1x128xf32>
      %41 = arith.addf %38, %40 : vector<1x128xf32>
      %42 = math.rsqrt %41 : vector<1x128xf32>
      %43 = arith.mulf %39, %42 : vector<1x128xf32>
      %c0_27 = arith.constant 0 : index
      %c0_28 = arith.constant 0 : index
      %44 = vector.load %arg10[%c0_27, %c0_28] : memref<1x128xf32, #tpu.memory_space<vmem>>, vector<1x128xf32>
      tpu.vector_store %arg10[%c0_27, %c0_28], %43 {strides = array<i32>} : memref<1x128xf32, #tpu.memory_space<vmem>>, vector<1x128xf32>,
      %c0_29 = arith.constant 0 : index
      %c0_30 = arith.constant 0 : index
      %45 = vector.load %arg6[%c0_29, %c0_30] : memref<1x128xf32, #tpu.memory_space<vmem>>, vector<1x128xf32>
      %46 = arith.mulf %31, %43 : vector<1x128xf32>
      %47 = arith.subf %45, %46 : vector<1x128xf32>
      %c0_31 = arith.constant 0 : index
      %c0_32 = arith.constant 0 : index
      %48 = vector.load %arg11[%c0_31, %c0_32] : memref<1x128xf32, #tpu.memory_space<vmem>>, vector<1x128xf32>
      tpu.vector_store %arg11[%c0_31, %c0_32], %47 {strides = array<i32>} : memref<1x128xf32, #tpu.memory_space<vmem>>, vector<1x128xf32>,
    } else {
    }
    %c1_i32_15 = arith.constant 1 : i32
    %26 = arith.cmpi eq, %arg0, %c1_i32_15 : i32
    %27 = arith.extui %26 : i1 to i32
    %c0_i32_16 = arith.constant 0 : i32
    %28 = arith.cmpi ne, %27, %c0_i32_16 : i32
    scf.if %28 {
      %c0_17 = arith.constant 0 : index
      %c0_18 = arith.constant 0 : index
      %29 = vector.load %arg10[%c0_17, %c0_18] : memref<1x128xf32, #tpu.memory_space<vmem>>, vector<1x128xf32>
      %30 = vector.broadcast %29 : vector<1x128xf32> to vector<32x128xf32>
      %31 = arith.mulf %10, %30 : vector<32x128xf32>
      %c0_19 = arith.constant 0 : index
      %c0_20 = arith.constant 0 : index
      %32 = vector.load %arg11[%c0_19, %c0_20] : memref<1x128xf32, #tpu.memory_space<vmem>>, vector<1x128xf32>
      %33 = vector.broadcast %32 : vector<1x128xf32> to vector<32x128xf32>
      %34 = arith.addf %31, %33 : vector<32x128xf32>
      %cst_21 = arith.constant 0.000000e+00 : f32
      %35 = vector.broadcast %cst_21 : f32 to vector<32x128xf32>
      %36 = arith.maximumf %34, %35 : vector<32x128xf32>
      %c0_22 = arith.constant 0 : index
      %c0_23 = arith.constant 0 : index
      %37 = vector.load %arg7[%c0_22, %c0_23] : memref<32x128xf32, #tpu.memory_space<vmem>>, vector<32x128xf32>
      tpu.vector_store %arg7[%c0_22, %c0_23], %36 {strides = array<i32>} : memref<32x128xf32, #tpu.memory_space<vmem>>, vector<32x128xf32>,
    } else {
    }
    return
  }
  func.func @transform_0(%arg0: i32, %arg1: i32) -> (i32, i32) {
    %c0_i32 = arith.constant 0 : i32
    %c0_i32_0 = arith.constant 0 : i32
    return %arg1, %c0_i32 : i32, i32
  }
  func.func @transform_1(%arg0: i32, %arg1: i32) -> (i32, i32) {
    %c0_i32 = arith.constant 0 : i32
    %c0_i32_0 = arith.constant 0 : i32
    %c0_i32_1 = arith.constant 0 : i32
    return %c0_i32, %c0_i32_0 : i32, i32
  }
  func.func @transform_2(%arg0: i32, %arg1: i32) -> (i32, i32) {
    %c0_i32 = arith.constant 0 : i32
    %c0_i32_0 = arith.constant 0 : i32
    %c0_i32_1 = arith.constant 0 : i32
    return %c0_i32, %c0_i32_0 : i32, i32
  }
  func.func @transform_3(%arg0: i32, %arg1: i32) -> (i32, i32) {
    %c0_i32 = arith.constant 0 : i32
    %c0_i32_0 = arith.constant 0 : i32
    %c0_i32_1 = arith.constant 0 : i32
    return %c0_i32, %c0_i32_0 : i32, i32
  }
  func.func @transform_4(%arg0: i32, %arg1: i32) -> (i32, i32) {
    %c0_i32 = arith.constant 0 : i32
    %c0_i32_0 = arith.constant 0 : i32
    %c0_i32_1 = arith.constant 0 : i32
    return %c0_i32, %c0_i32_0 : i32, i32
  }
  func.func @transform_5(%arg0: i32, %arg1: i32) -> (i32, i32) {
    %0 = arith.muli %arg1, %arg0 : i32
    %c0_i32 = arith.constant 0 : i32
    %c0_i32_0 = arith.constant 0 : i32
    return %0, %c0_i32 : i32, i32
  }
}

</mosaic_0001>

<bundles_post_ra>
// kernel: tpu_custom_call.1
= control target key start
LH: loop header
LB: loop body
LE: loop exit
PB: predicated region body
PF: predicated region fallthrough
CT: control target
= control target key end

     0   :  { %10 = vsyncpa [#allocation7], 0  ;;  %s791_s0 = inlined_call_operand.vmem [shape: bf16[32,16], index: 0, kind: input, shape index: {}]   ;;  %s792_s1 = inlined_call_operand.vmem [shape: bf16[16,128], index: 1, kind: input, shape index: {}]   ;;  %s793_s2 = inlined_call_operand.vmem [shape: f32[1,128], index: 2, kind: input, shape index: {}]   ;;  %s794_s3 = inlined_call_operand.vmem [shape: f32[1,128], index: 3, kind: input, shape index: {}]   ;;  %s795_s4 = inlined_call_operand.vmem [shape: f32[1,128], index: 4, kind: input, shape index: {}]   ;;  %s796_s5 = inlined_call_operand.hbm [shape: f32[32,128], index: 5, kind: output, shape index: {}]  }
   0x1   :  { %12 = vsyncpa [#allocation7 + $0x1], 0  ;;  %s705_s18 = smov 0   ;;  %s707_s19 = smov 0  }
   0x2   :  { %s709_s20 = smov 0  }
   0x3 LB: > { %s539_s21 = sadd.s32 4294967295, %s669_s20   ;;  %s540_s22 = sadd.s32 4294967294, %s669_s20   ;;  %s669_s20 = sphi %s709_s20, %s18_s20   ;;  %s665_s19 = sphi %s707_s19, %s798_s19   ;;  %s661_s18 = sphi %s705_s18, %s797_s18  }
   0x4   : > { %s30_s23 = sadd.s32 1, %s665_s19  ;;  %p543_p0 = scmp.ge.s32.totalorder %s669_s20, 1 }
   0x5   : > { %p32_p1 = scmp.ge.s32.totalorder %s30_s23, 2  ;;  %p205_p2 = scmp.lt.s32.totalorder %s669_s20, 3 }
   0x7   : > { %s800_s23 = smov (%p32_p1, %s30_s23), 0  ;;  %p206_p3 = pnand %p543_p0, %p205_p2 }
   0x8   : > { %p242_p4 = scmp.eq.s32.totalorder (!%p206_p3), %s661_s18, 0 }
   0x9   : > { %209 = sbr.rel (%p206_p3) target bundleno = 244 (0xf4), region = 40 }
   0xe   : > { %247 = sbr.rel (!%p242_p4) target bundleno = 19 (0x13), region = 44  ;;  %v671_v0 = vmov (%p242_p4), 0.0  }
   0xf   : > { %248 = vst [vmem:[#allocation2] sm:$0x1] (%p242_p4), %v671_v0 }
  0x10   : > { %249 = vst [vmem:[#allocation3] sm:$0x1] (%p242_p4), %v671_v0 }
  0x13 PF: > { %v568_v1 = vld [vmem:[%s792_s1] sm:$0xff]  ;;  %v567_v3 = vld [vmem:[%s791_s0 + $0x8] sm:$0xff]  ;;  %vm276_vm0 = vcmask 130048   ;;  %v338_v13 = vlaneseq (%p242_p4) }
  0x14   : > { %v566_v2 = vld [vmem:[%s791_s0] sm:$0xff]  ;;  %290 = vmatpush.bf16.msra.mxu0 %v568_v1  ;;  %570 = vmatpush.bf16.msra.mxu1 %v568_v1 }
  0x15   : > { %v610_v4 = vld [vmem:[%s793_s2] ss:$0 sm:$0xff]  ;;  %v339_v17 = vshrl.u32 (%p242_p4), %v338_v13, 7 }
  0x16   : > { %v364_v36 = vld [vmem:[#allocation2] sm:$0x1] (%p242_p4) }
  0x17   : > { %557 = vmatmul.msk.bf16.vlgmr.msra.gmra.mxu0 %vm276_vm0, %v566_v2  ;;  %558 = vmatmul.msk.bf16.vlgmr.msra.gmra.mxu1 %vm276_vm0, %v567_v3  ;;  %v342_v20 = vadd.s32 (%p242_p4), 24, %v339_v17  ;;  %v376_v39 = vld [vmem:[#allocation3] sm:$0x1] (%p242_p4) }
  0x19   : > { %vm351_vm1 = vcmp.lt.s32.totalorder (%p242_p4), %v342_v20, 28 }
  0x94   : > { %v292_v5 = vpop.f32.mrf.mxu0  ;;  %v297_v6 = vpop.f32.mrf.mxu1 }
  0x95   : > { %v742_v7 = vadd.f32 %v610_v4, %v292_v5  ;;  %v744_v8 = vadd.f32 %v610_v4, %v297_v6 }
  0x97   : > { %v377_v15 = vmul.f32 (%p242_p4), %v742_v7, %v742_v7  ;;  %v379_v18 = vmul.f32 (%p242_p4), %v744_v8, %v744_v8 }
  0x99   : > { %336 = sbr.rel (!%p242_p4) target bundleno = 182 (0xb6), region = 52 }
  0x9c   : > { %v294_v9 = vpop.f32.mrf.mxu0  ;;  %v299_v10 = vpop.f32.mrf.mxu1 }
  0x9d   : > { %v746_v11 = vadd.f32 %v610_v4, %v294_v9  ;;  %v748_v12 = vadd.f32 %v610_v4, %v299_v10 }
  0x9f   : > { %v365_v14 = vadd.f32 %v746_v11, %v742_v7  ;;  %v378_v16 = vmul.f32 %v746_v11, %v746_v11  ;;  %v363_v23 = vsel %vm351_vm1, %v748_v12, 0.0 }
  0xa0   : > { %v380_v25 = vmul.f32 %v363_v23, %v363_v23 }
  0xa1   : > { %v381_v19 = vadd.f32 %v378_v16, %v377_v15  ;;  %v366_v21 = vadd.f32 %v365_v14, %v744_v8 }
  0xa3   : > { %v382_v22 = vadd.f32 %v381_v19, %v379_v18  ;;  %v367_v24 = vadd.f32 %v366_v21, %v363_v23 }
  0xa5   : > { %v368_v26 = vrot.slane %v367_v24, 4  ;;  %v383_v27 = vadd.f32 %v382_v22, %v380_v25 }
  0xa7   : > { %v369_v28 = vadd.f32 %v368_v26, %v367_v24  ;;  %v384_v29 = vrot.slane %v383_v27, 4 }
  0xa9   : > { %v370_v30 = vrot.slane %v369_v28, 2  ;;  %v385_v31 = vadd.f32 %v384_v29, %v383_v27 }
  0xab   : > { %v371_v32 = vadd.f32 %v370_v30, %v369_v28  ;;  %v386_v33 = vrot.slane %v385_v31, 2 }
  0xad   : > { %v372_v34 = vrot.slane %v371_v32, 1  ;;  %v387_v35 = vadd.f32 %v386_v33, %v385_v31 }
  0xaf   : > { %v373_v37 = vadd.f32 %v372_v34, %v371_v32  ;;  %v388_v38 = vrot.slane %v387_v35, 1 }
  0xb1   : > { %v374_v40 = vadd.f32 %v373_v37, %v364_v36  ;;  %v389_v41 = vadd.f32 %v388_v38, %v387_v35 }
  0xb3   : > { %375 = vst [vmem:[#allocation2] sm:$0x1] %v374_v40  ;;  %v390_v42 = vadd.f32 %v389_v41, %v376_v39 }
  0xb5   : > { %391 = vst [vmem:[#allocation3] sm:$0x1] %v390_v42 }
  0xb6 PF: > { %p392_p5 = scmp.eq.s32.totalorder %s661_s18, 1 }
  0xb7   : > { %v404_v56 = vld [vmem:[%s794_s3] sm:$0x1] (%p392_p5) }
  0xb8   : > { %396 = sbr.rel (!%p392_p5) target bundleno = 222 (0xde), region = 56  ;;  %v418_v60 = vld [vmem:[%s795_s4] sm:$0x1] (%p392_p5) }
  0xba   : > { %v397_v43 = vld [vmem:[#allocation2] sm:$0x1] (%p392_p5) }
  0xbb   : > { %v398_v45 = vmul.f32 (%p392_p5), 0.035714287, %v397_v43 }
  0xbc   : > { %v399_v44 = vld [vmem:[#allocation3] sm:$0x1] (%p392_p5) }
  0xbd   : > { %v400_v46 = vmul.f32 0.035714287, %v399_v44  ;;  %v401_v47 = vmul.f32 %v398_v45, %v398_v45 }
  0xbf   : > { %v402_v48 = vsub.f32 %v400_v46, %v401_v47 }
  0xc1   : > { %v403_v49 = vmax.f32 %v402_v48, 0.0 }
  0xc3   : > { %v405_v50 = vadd.f32 1e-05, %v403_v49 }
  0xc5   : > { %611 = vrsqrt.f32 %v405_v50  ;;  %vm412_vm2 = vweird.f32 %v405_v50 }
  0xcb   : > { %v612_v51 = vpop.eup %611 }
  0xcc   : > { %v407_v52 = vmul.f32 %v612_v51, %v405_v50  ;;  %vm413_vm3 = vweird.f32 %v612_v51 }
  0xcd   : > { %vm414_vm4 = vmor %vm412_vm2, %vm413_vm3 }
  0xce   : > { %v408_v53 = vmul.f32 %v612_v51, %v407_v52 }
  0xd0   : > { %v409_v54 = vmul.f32 0.5, %v408_v53 }
  0xd2   : > { %v410_v55 = vsub.f32 1.5, %v409_v54 }
  0xd4   : > { %v411_v57 = vmul.f32 %v612_v51, %v410_v55 }
  0xd6   : > { %v415_v58 = vsel %vm414_vm4, %v612_v51, %v411_v57 }
  0xd7   : > { %v416_v59 = vmul.f32 %v415_v58, %v404_v56 }
  0xd9   : > { %417 = vst [vmem:[#allocation4] sm:$0x1] %v416_v59  ;;  %v419_v61 = vmul.f32 %v416_v59, %v398_v45 }
  0xdb   : > { %v420_v62 = vsub.f32 %v418_v60, %v419_v61 }
  0xdd   : > { %421 = vst [vmem:[#allocation5] sm:$0x1] %v420_v62 }
  0xde PF: > { %p560_p6 = scmp.ne.s32.totalorder %s661_s18, 1 }
  0xe0   : > { %424 = sbr.rel (%p560_p6) target bundleno = 240 (0xf0), region = 60 }
  0xe5   : > { %v613_v63 = vld [vmem:[#allocation4] ss:$0 sm:$0xff]  ;;  %v614_v0 = vld [vmem:[#allocation5] ss:$0 sm:$0xff] }
  0xe6   : > { %v429_v1 = vmul.f32 %v613_v63, %v742_v7  ;;  %v430_v2 = vmul.f32 %v613_v63, %v746_v11  ;;  %v431_v3 = vmul.f32 %v613_v63, %v744_v8  ;;  %v432_v4 = vmul.f32 %v613_v63, %v748_v12 }
  0xe8   : > { %v437_v5 = vadd.f32 %v614_v0, %v429_v1  ;;  %v438_v6 = vadd.f32 %v614_v0, %v430_v2  ;;  %v439_v9 = vadd.f32 %v614_v0, %v431_v3  ;;  %v440_v10 = vadd.f32 %v614_v0, %v432_v4 }
  0xea   : > { %v441_v13 = vmax.f32 %v437_v5, 0.0  ;;  %v442_v14 = vmax.f32 %v438_v6, 0.0  ;;  %v443_v15 = vmax.f32 %v439_v9, 0.0  ;;  %v444_v16 = vmax.f32 %v440_v10, 0.0 }
  0xec   : > { %445 = vst [vmem:[#allocation6] sm:$0xff] %v441_v13 }
  0xed   : > { %446 = vst [vmem:[#allocation6 + $0x8] sm:$0xff] %v442_v14 }
  0xee   : > { %447 = vst [vmem:[#allocation6 + $0x10] sm:$0xff] %v443_v15 }
  0xef   : > { %448 = vst [vmem:[#allocation6 + $0x18] sm:$0xff] %v444_v16 }
  0xf0 PF: > { %p579_p7 = scmp.eq.s32.totalorder %s539_s21, 1  ;;  %s465_s13 = sshll.u32 %s796_s5, 4  ;;  %s466_s13 = int_to_ptr.hbm [resolvable:$true] %s465_s13 }
  0xf1   : > { %s672_s14 = smov [#allocation6]   ;;  %s673_s16 = smov 128  }
  0xf2   : > { %s463_s15 = sshll.u32 %s672_s14, 4  ;;  %s674_s17 = smov 8   ;;  %s464_s15 = int_to_ptr.vmem [resolvable:$true] %s463_s15 }
  0xf3   : > { %572 = dma.vmem_to_hbm [thread:$0]  (%p579_p7), %s464_s15, 512, %s466_s13, [#allocation7], %s673_s16, %s673_s16, %s674_s17  }
  0xf4 PF: > { %p580_p8 = scmp.ge.s32.totalorder %s669_s20, 2  ;;  %p581_p9 = scmp.eq.s32.totalorder %s540_s22, 1 }
  0xf6   : > { %p576_p10 = pnand %p581_p9, %p580_p8 }
  0xf8   : > { %p577_p11 = pneg %p576_p10 }
  0xfa   : > { %656 = dma.done.wait (%p577_p11), [#allocation7], 512  }
  0xfb   : > { %658 = vsyncadd (%p577_p11), [#allocation7], 4294966784  ;;  %s18_s20 = sadd.s32 1, %s669_s20   ;;  %s797_s18 = smov %s665_s19 }
  0xfc   : > { %p15_p12 = scmp.ge.s32.totalorder %s18_s20, 4   ;;  %s798_s19 = smov %s800_s23 }
  0xfe   :  { %17 = sbr.rel (!%p15_p12) target bundleno = 3 (0x3), region = 95 }
 0x103   :  { %487 = vsyncpa [#allocation7], 1 }
 0x104   :  { %489 = vsyncpa [#allocation7 + $0x1], 1 }

</bundles_post_ra>
